<compile_context>
chip_gen: v5e
topology: v5e:2x2
jax: 0.10.0
libtpu: 0.0.40
codegen_flags: <defaults>
</compile_context>

<pallas_src>
import jax
import jax.numpy as jnp
from jax.experimental import pallas as pl
from jax.experimental.pallas import tpu as pltpu


def _round_up(n, m):
    return ((n + m - 1) // m) * m


# ----------------------------------------------------------------------------
# Pallas kernel: fused 3-layer MLP on one batch tile (transposed layout).
#   b3_ref : (1,) f32 scalar bias in SMEM
#   xa_ref : [in_dim, TILE_B] bf16 activations, batch on the lane axis
#   w*_ref : transposed weights (bf16), VMEM-resident across grid steps
#   b1/b2  : [H, 1] f32 bias columns
#   o_ref  : [1, TILE_B] f32 lane-dense q row
# ----------------------------------------------------------------------------
def soft_q_kernel(b3_ref, xa_ref, w1_ref, b1_ref, w2_ref, b2_ref, w3_ref, o_ref):
    # Layer 1: [H1, in_dim] @ [in_dim, TILE_B] -> [H1, TILE_B], f32 MXU accum.
    h = jnp.dot(w1_ref[...], xa_ref[...], preferred_element_type=jnp.float32)
    h = jnp.maximum(h + b1_ref[...], 0.0)                      # f32 bias + ReLU

    # Layer 2: [H2, H1] @ [H1, TILE_B] -> [H2, TILE_B]
    h = jnp.dot(w2_ref[...], h.astype(w2_ref.dtype),
                preferred_element_type=jnp.float32)
    h = jnp.maximum(h + b2_ref[...], 0.0)

    # Output layer: [1, H2] @ [H2, TILE_B] -> [1, TILE_B] lane-dense q row.
    q = jnp.dot(w3_ref[...], h.astype(w3_ref.dtype),
                preferred_element_type=jnp.float32)
    o_ref[...] = q + b3_ref[0]


# ----------------------------------------------------------------------------
# Wrapper
# ----------------------------------------------------------------------------
def soft_q_forward(x, a, params, *, tile_b=512, compute_dtype=jnp.bfloat16):
    """x: [B, obs_dim] f32, a: [B, act_dim] f32 -> q: [B, 1] f32."""
    w1, b1, w2, b2, w3, b3 = params          # torch layout: w1 [in_dim, H1], ...
    B = x.shape[0]
    obs_dim, act_dim = x.shape[1], a.shape[1]
    in_dim = obs_dim + act_dim
    h1, h2 = w1.shape[1], w2.shape[1]

    # concat([x, a], 1) in the wrapper: single K=in_dim matmul in the kernel.
    xa = jnp.concatenate([x, a], axis=1)

    # Batch lives on the lane axis: tiles are multiples of 128, up to `tile_b`.
    tile = min(tile_b, _round_up(B, 128))
    bp = _round_up(B, tile)
    if bp != B:
        xa = jnp.pad(xa, ((0, bp - B), (0, 0)))

    # Transposed, lane-dense layout; bf16 matmul operands, f32 biases.
    xa_t = xa.T.astype(compute_dtype)                      # [in_dim, Bp]
    w1_t = w1.T.astype(compute_dtype)                      # [H1, in_dim]
    w2_t = w2.T.astype(compute_dtype)                      # [H2, H1]
    w3_r = w3.T.astype(compute_dtype)                      # [1, H2]
    b1_c = b1.reshape(h1, 1).astype(jnp.float32)
    b2_c = b2.reshape(h2, 1).astype(jnp.float32)
    b3_s = b3.reshape(1).astype(jnp.float32)               # SMEM scalar

    grid = (bp // tile,)
    itm = jnp.dtype(compute_dtype).itemsize
    cost = pl.CostEstimate(
        flops=2 * bp * (in_dim * h1 + h1 * h2 + h2),
        transcendentals=0,
        bytes_accessed=(xa_t.size * itm
                        + (w1_t.size + w2_t.size + w3_r.size) * itm
                        + (h1 + h2 + 1) * 4
                        + bp * 4),
    )

    resident = lambda shape: pl.BlockSpec(shape, lambda i: (0, 0))  # weights stay in VMEM

    q_row = pl.pallas_call(
        soft_q_kernel,
        out_shape=jax.ShapeDtypeStruct((1, bp), jnp.float32),
        grid=grid,
        in_specs=[
            pl.BlockSpec(memory_space=pltpu.MemorySpace.SMEM),      # b3 scalar
            pl.BlockSpec((in_dim, tile), lambda i: (0, i)),         # xa tile (pipelined)
            resident((h1, in_dim)),                                 # W1^T
            resident((h1, 1)),                                      # b1
            resident((h2, h1)),                                     # W2^T
            resident((h2, 1)),                                      # b2
            resident((1, h2)),                                      # W3^T
        ],
        out_specs=pl.BlockSpec((1, tile), lambda i: (0, i)),        # lane-dense q row
        compiler_params=pltpu.CompilerParams(
            dimension_semantics=("parallel",)),
        cost_estimate=cost,
    )(b3_s, xa_t, w1_t, b1_c, w2_t, b2_c, w3_r)

    return q_row[0, :B].reshape(B, 1)


# ----------------------------------------------------------------------------
# Deterministic parameter init (mimics torch.nn.Linear: U(-k, k), k=1/sqrt(fan_in))
# ----------------------------------------------------------------------------
def init_params(key, obs_dim, act_dim, hiddens):
    in_dim = obs_dim + act_dim
    h1, h2 = hiddens
    keys = jax.random.split(key, 6)

    def lin(kw, kb, fan_in, fan_out):
        bound = 1.0 / jnp.sqrt(float(fan_in))
        w = jax.random.uniform(kw, (fan_in, fan_out), jnp.float32, -bound, bound)
        b = jax.random.uniform(kb, (fan_out,), jnp.float32, -bound, bound)
        return w, b

    w1, b1 = lin(keys[0], keys[1], in_dim, h1)
    w2, b2 = lin(keys[2], keys[3], h1, h2)
    w3, b3 = lin(keys[4], keys[5], h2, 1)
    return (w1, b1, w2, b2, w3, b3)


# Pure-JAX reference with identical bf16-operand / f32-accumulation casts.
def soft_q_ref(x, a, params, compute_dtype=jnp.bfloat16):
    w1, b1, w2, b2, w3, b3 = params
    xa = jnp.concatenate([x, a], axis=1).astype(compute_dtype)
    h = jnp.dot(xa, w1.astype(compute_dtype),
                preferred_element_type=jnp.float32) + b1
    h = jnp.maximum(h, 0.0)
    h = jnp.dot(h.astype(compute_dtype), w2.astype(compute_dtype),
                preferred_element_type=jnp.float32) + b2
    h = jnp.maximum(h, 0.0)
    q = jnp.dot(h.astype(compute_dtype), w3.astype(compute_dtype),
                preferred_element_type=jnp.float32) + b3
    return q


if __name__ == "__main__":
    B, OBS_DIM, ACT_DIM = 8, 16, 4
    HIDDENS = (32, 32)

    key = jax.random.PRNGKey(0)
    kx, ka, kp = jax.random.split(key, 3)

    x = jax.random.normal(kx, (B, OBS_DIM), jnp.float32)      # states
    a = jax.random.normal(ka, (B, ACT_DIM), jnp.float32)      # actions
    params = init_params(kp, OBS_DIM, ACT_DIM, HIDDENS)

    q = soft_q_forward(x, a, params)
    q = jax.block_until_ready(q)

    q_ref = soft_q_ref(x, a, params)
    assert q.shape == (B, 1)
    assert jnp.allclose(q, q_ref, atol=1e-4, rtol=1e-4), (q, q_ref)

    print("KERNEL_OK")
</pallas_src>

<mosaic_0001>
module attributes {stable_mosaic.version = 11 : i64} {
  func.func @soft_q_kernel(%arg0: i32, %arg1: memref<1xf32, #tpu.memory_space<smem>>, %arg2: memref<20x128xbf16, #tpu.memory_space<vmem>>, %arg3: memref<32x20xbf16, #tpu.memory_space<vmem>>, %arg4: memref<32x1xf32, #tpu.memory_space<vmem>>, %arg5: memref<32x32xbf16, #tpu.memory_space<vmem>>, %arg6: memref<32x1xf32, #tpu.memory_space<vmem>>, %arg7: memref<1x32xbf16, #tpu.memory_space<vmem>>, %arg8: memref<1x128xf32, #tpu.memory_space<vmem>>) attributes {dimension_semantics = [#tpu.dimension_semantics<parallel>], iteration_bounds = array<i64: 1>, scalar_prefetch = 0 : i64, scratch_operands = 0 : i64, tpu.core_type = #tpu.core_type<tc>, window_params = [{transform_indices = @transform_0, window_bounds = array<i64: 1>}, {transform_indices = @transform_1, window_bounds = array<i64: 20, 128>}, {pipeline_mode = #tpu.pipeline_mode<synchronous>, transform_indices = @transform_2, window_bounds = array<i64: 32, 20>}, {pipeline_mode = #tpu.pipeline_mode<synchronous>, transform_indices = @transform_3, window_bounds = array<i64: 32, 1>}, {pipeline_mode = #tpu.pipeline_mode<synchronous>, transform_indices = @transform_4, window_bounds = array<i64: 32, 32>}, {pipeline_mode = #tpu.pipeline_mode<synchronous>, transform_indices = @transform_5, window_bounds = array<i64: 32, 1>}, {pipeline_mode = #tpu.pipeline_mode<synchronous>, transform_indices = @transform_6, window_bounds = array<i64: 1, 32>}, {transform_indices = @transform_7, window_bounds = array<i64: 1, 128>}]} {
    %c0 = arith.constant 0 : index
    %c0_0 = arith.constant 0 : index
    %0 = vector.load %arg3[%c0, %c0_0] : memref<32x20xbf16, #tpu.memory_space<vmem>>, vector<32x20xbf16>
    %c0_1 = arith.constant 0 : index
    %c0_2 = arith.constant 0 : index
    %1 = vector.load %arg2[%c0_1, %c0_2] : memref<20x128xbf16, #tpu.memory_space<vmem>>, vector<20x128xbf16>
    %cst = arith.constant dense<0.000000e+00> : vector<32x128xf32>
    %2 = tpu.matmul %0, %1, %cst {dimension_numbers = #tpu.dot_dimension_numbers<[1], [0], [0], [1], [0, 0, 1, 1], [], []>} : vector<32x20xbf16>, vector<20x128xbf16>, vector<32x128xf32> -> vector<32x128xf32>
    %c0_3 = arith.constant 0 : index
    %c0_4 = arith.constant 0 : index
    %3 = vector.load %arg4[%c0_3, %c0_4] : memref<32x1xf32, #tpu.memory_space<vmem>>, vector<32x1xf32>
    %4 = vector.broadcast %3 : vector<32x1xf32> to vector<32x128xf32>
    %5 = arith.addf %2, %4 : vector<32x128xf32>
    %cst_5 = arith.constant 0.000000e+00 : f32
    %6 = vector.broadcast %cst_5 : f32 to vector<32x128xf32>
    %7 = arith.maximumf %5, %6 : vector<32x128xf32>
    %c0_6 = arith.constant 0 : index
    %c0_7 = arith.constant 0 : index
    %8 = vector.load %arg5[%c0_6, %c0_7] : memref<32x32xbf16, #tpu.memory_space<vmem>>, vector<32x32xbf16>
    %9 = arith.truncf %7 : vector<32x128xf32> to vector<32x128xbf16>
    %cst_8 = arith.constant dense<0.000000e+00> : vector<32x128xf32>
    %10 = tpu.matmul %8, %9, %cst_8 {dimension_numbers = #tpu.dot_dimension_numbers<[1], [0], [0], [1], [0, 0, 1, 1], [], []>} : vector<32x32xbf16>, vector<32x128xbf16>, vector<32x128xf32> -> vector<32x128xf32>
    %c0_9 = arith.constant 0 : index
    %c0_10 = arith.constant 0 : index
    %11 = vector.load %arg6[%c0_9, %c0_10] : memref<32x1xf32, #tpu.memory_space<vmem>>, vector<32x1xf32>
    %12 = vector.broadcast %11 : vector<32x1xf32> to vector<32x128xf32>
    %13 = arith.addf %10, %12 : vector<32x128xf32>
    %cst_11 = arith.constant 0.000000e+00 : f32
    %14 = vector.broadcast %cst_11 : f32 to vector<32x128xf32>
    %15 = arith.maximumf %13, %14 : vector<32x128xf32>
    %c0_12 = arith.constant 0 : index
    %c0_13 = arith.constant 0 : index
    %16 = vector.load %arg7[%c0_12, %c0_13] : memref<1x32xbf16, #tpu.memory_space<vmem>>, vector<1x32xbf16>
    %17 = arith.truncf %15 : vector<32x128xf32> to vector<32x128xbf16>
    %cst_14 = arith.constant dense<0.000000e+00> : vector<1x128xf32>
    %18 = tpu.matmul %16, %17, %cst_14 {dimension_numbers = #tpu.dot_dimension_numbers<[1], [0], [0], [1], [0, 0, 1, 1], [], []>} : vector<1x32xbf16>, vector<32x128xbf16>, vector<1x128xf32> -> vector<1x128xf32>
    %c0_15 = arith.constant 0 : index
    %19 = memref.load %arg1[%c0_15] : memref<1xf32, #tpu.memory_space<smem>>
    %20 = vector.broadcast %19 : f32 to vector<1x128xf32>
    %21 = arith.addf %18, %20 : vector<1x128xf32>
    %c0_16 = arith.constant 0 : index
    %c0_17 = arith.constant 0 : index
    %22 = vector.load %arg8[%c0_16, %c0_17] : memref<1x128xf32, #tpu.memory_space<vmem>>, vector<1x128xf32>
    tpu.vector_store %arg8[%c0_16, %c0_17], %21 {strides = array<i32>} : memref<1x128xf32, #tpu.memory_space<vmem>>, vector<1x128xf32>,
    return
  }
  func.func @transform_0(%arg0: i32) -> i32 {
    %c0_i32 = arith.constant 0 : i32
    %c0_i32_0 = arith.constant 0 : i32
    return %c0_i32 : i32
  }
  func.func @transform_1(%arg0: i32) -> (i32, i32) {
    %c0_i32 = arith.constant 0 : i32
    %c0_i32_0 = arith.constant 0 : i32
    return %c0_i32, %arg0 : i32, i32
  }
  func.func @transform_2(%arg0: i32) -> (i32, i32) {
    %c0_i32 = arith.constant 0 : i32
    %c0_i32_0 = arith.constant 0 : i32
    %c0_i32_1 = arith.constant 0 : i32
    return %c0_i32, %c0_i32_0 : i32, i32
  }
  func.func @transform_3(%arg0: i32) -> (i32, i32) {
    %c0_i32 = arith.constant 0 : i32
    %c0_i32_0 = arith.constant 0 : i32
    %c0_i32_1 = arith.constant 0 : i32
    return %c0_i32, %c0_i32_0 : i32, i32
  }
  func.func @transform_4(%arg0: i32) -> (i32, i32) {
    %c0_i32 = arith.constant 0 : i32
    %c0_i32_0 = arith.constant 0 : i32
    %c0_i32_1 = arith.constant 0 : i32
    return %c0_i32, %c0_i32_0 : i32, i32
  }
  func.func @transform_5(%arg0: i32) -> (i32, i32) {
    %c0_i32 = arith.constant 0 : i32
    %c0_i32_0 = arith.constant 0 : i32
    %c0_i32_1 = arith.constant 0 : i32
    return %c0_i32, %c0_i32_0 : i32, i32
  }
  func.func @transform_6(%arg0: i32) -> (i32, i32) {
    %c0_i32 = arith.constant 0 : i32
    %c0_i32_0 = arith.constant 0 : i32
    %c0_i32_1 = arith.constant 0 : i32
    return %c0_i32, %c0_i32_0 : i32, i32
  }
  func.func @transform_7(%arg0: i32) -> (i32, i32) {
    %c0_i32 = arith.constant 0 : i32
    %c0_i32_0 = arith.constant 0 : i32
    return %c0_i32, %arg0 : i32, i32
  }
}

</mosaic_0001>

<bundles_post_ra>
// kernel: tpu_custom_call.1
= control target key start
LH: loop header
LB: loop body
LE: loop exit
PB: predicated region body
PF: predicated region fallthrough
CT: control target
= control target key end

     0   :  { %v284_v2 = vmov 0   ;;  %vm86_vm0 = vcmask 1041408   ;;  %s380_s0 = inlined_call_operand.<no memory space> [shape: f32[1], index: 0, kind: input, shape index: {}]   ;;  %s381_s1 = inlined_call_operand.vmem [shape: bf16[20,128], index: 1, kind: input, shape index: {}]   ;;  %s382_s2 = inlined_call_operand.vmem [shape: bf16[32,20], index: 2, kind: input, shape index: {}]   ;;  %s383_s3 = inlined_call_operand.vmem [shape: f32[32,1], index: 3, kind: input, shape index: {}]   ;;  %s384_s4 = inlined_call_operand.vmem [shape: bf16[32,32], index: 4, kind: input, shape index: {}]   ;;  %s385_s5 = inlined_call_operand.vmem [shape: f32[32,1], index: 5, kind: input, shape index: {}]   ;;  %s386_s6 = inlined_call_operand.vmem [shape: bf16[1,32], index: 6, kind: input, shape index: {}]   ;;  %s387_s7 = inlined_call_operand.hbm [shape: f32[1,128], index: 7, kind: output, shape index: {}]  }
   0x1   :  { %v35_v0 = vld [vmem:[%s381_s1 + $0x8] sm:$0x3]  ;;  %255 = vset.pattern.permute.xlu0 %v284_v2  ;;  %v38_v3 = vld [vmem:[%s383_s3 + $0x10] sm:$0xff]  ;;  %256 = vset.pattern.permute.xlu1 %v284_v2  ;;  %v36_v4 = vld [vmem:[%s383_s3] sm:$0xff] }
   0x2   :  { %v75_v1 = vunpack.c.l.b16 %v35_v0  ;;  %52 = vperm.xlu0 %255, %v38_v3   ;;  %42 = vperm.xlu1 %256, %v36_v4  }
   0x3   :  { %257 = vset.pattern.permute.xlu2 %v284_v2 }
   0x4   :  { %v77_v5 = vpack.c.b16 %v75_v1, %v75_v1 }
   0x5   :  { %13 = vsyncpa [#allocation4], 0  ;;  %v248_v7 = vld [vmem:[%s381_s1] sm:$0xff]  ;;  %v39_v8 = vld [vmem:[%s383_s3 + $0x18] sm:$0xff]  ;;  %vm79_vm1 = vcmask 162816   ;;  %vm153_vm2 = vcmask 261120   ;;  %v187_v55 = vstv %s380_s0 }
   0x6   :  { %v88_v6 = vsel %vm86_vm0, %v77_v5, 0  ;;  %v37_v9 = vld [vmem:[%s383_s3 + $0x8] sm:$0xff]  ;;  %v246_v11 = vld [vmem:[%s382_s2] sm:$0xff]  ;;  %v121_v19 = vld [vmem:[%s385_s5 + $0x10] sm:$0xff]  ;;  %s285_s28 = smov [#allocation3]   ;;  %s212_s9 = sshll.u32 %s387_s7, 4  ;;  %s213_s9 = int_to_ptr.hbm [resolvable:$true] %s212_s9 }
   0x7   :  { %251 = vmatpush.bf16.msra.mxu3 %v88_v6  ;;  %96 = vmatpush.bf16.msra.mxu0 %v88_v6  ;;  %v247_v10 = vld [vmem:[%s382_s2 + $0x8] sm:$0xff]  ;;  %v119_v12 = vld [vmem:[%s385_s5] sm:$0xff]  ;;  %v122_v29 = vld [vmem:[%s385_s5 + $0x18] sm:$0xff]  ;;  %s210_s29 = sshll.u32 %s285_s28, 4  ;;  %s211_s29 = int_to_ptr.vmem [resolvable:$true] %s210_s29 }
   0x8   :  { %v120_v13 = vld [vmem:[%s385_s5 + $0x8] sm:$0xff]  ;;  %135 = vperm.xlu2 %257, %v121_v19   ;;  %v249_v34 = vld [vmem:[%s384_s4] sm:$0xff] }
   0x9   :  { %v250_v35 = vld [vmem:[%s384_s4 + $0x8] sm:$0xff]  ;;  %v183_v54 = vld [vmem:[%s386_s6] sm:$0x1] }
   0xa   :  { %57 = vperm.xlu0 %255, %v39_v8   ;;  %47 = vperm.xlu1 %256, %v37_v9  }
   0xb   :  { %252 = vmatpush.bf16.msra.mxu3 %v248_v7  ;;  %97 = vmatpush.bf16.msra.mxu0 %v248_v7 }
   0xe   :  { %234 = vmatmul.msk.bf16.vlgmr.msra.gmra.mxu3 %vm79_vm1, %v247_v10  ;;  %233 = vmatmul.msk.bf16.vlgmr.msra.gmra.mxu0 %vm79_vm1, %v246_v11 }
  0x10   :  { %140 = vperm.xlu2 %257, %v122_v29  }
  0x12   :  { %125 = vperm.xlu0 %255, %v119_v12   ;;  %130 = vperm.xlu1 %256, %v120_v13  }
  0x62   :  { %v136_v38 = vpop.permute.xlu2 %135 }
  0x6a   :  { %v141_v42 = vpop.permute.xlu2 %140 }
  0x74   :  { %v53_v15 = vpop.permute.xlu0 %52  ;;  %v43_v16 = vpop.permute.xlu1 %42 }
  0x7c   :  { %v58_v20 = vpop.permute.xlu0 %57  ;;  %v48_v22 = vpop.permute.xlu1 %47 }
  0x84   :  { %v131_v40 = vpop.permute.xlu1 %130  ;;  %v126_v46 = vpop.permute.xlu0 %125 }
  0x8b   :  { %v99_v14 = vpop.f32.mrf.mxu0 }
  0x8c   :  { %v100_v24 = vadd.f32 %v99_v14, %v43_v16 }
  0x8e   :  { %v109_v30 = vmax.f32 %v100_v24, 0.0 }
  0x91   :  { %v104_v17 = vpop.f32.mrf.mxu3 }
  0x92   :  { %v105_v21 = vadd.f32 %v104_v17, %v53_v15 }
  0x93   :  { %v101_v18 = vpop.f32.mrf.mxu0 }
  0x94   :  { %v102_v25 = vadd.f32 %v101_v18, %v48_v22  ;;  %v111_v27 = vmax.f32 %v105_v21, 0.0 }
  0x96   :  { %v110_v31 = vmax.f32 %v102_v25, 0.0 }
  0x98   :  { %v117_v33 = vpack.c.bf16 %v110_v31, %v109_v30 }
  0x99   :  { %v106_v23 = vpop.f32.mrf.mxu3 }
  0x9a   :  { %v107_v26 = vadd.f32 %v106_v23, %v58_v20 }
  0x9c   :  { %v112_v28 = vmax.f32 %v107_v26, 0.0 }
  0x9e   :  { %v118_v32 = vpack.c.bf16 %v112_v28, %v111_v27 }
  0xa0   :  { %166 = vmatpush.bf16.msra.mxu1 %v118_v32 }
  0xa4   :  { %167 = vmatpush.bf16.msra.mxu1 %v117_v33 }
  0xa7   :  { %243 = vmatmul.msk.bf16.vlgmr.msra.gmra.mxu1 %vm153_vm2, %v249_v34 }
  0xb7   :  { %244 = vmatmul.msk.bf16.gmra.mxu1 %vm153_vm2, %v250_v35 }
 0x124   :  { %v169_v36 = vpop.f32.mrf.mxu1 }
 0x125   :  { %v170_v47 = vadd.f32 %v169_v36, %v126_v46 }
 0x127   :  { %v179_v52 = vmax.f32 %v170_v47, 0.0 }
 0x12c   :  { %v171_v37 = vpop.f32.mrf.mxu1 }
 0x12d   :  { %v172_v44 = vadd.f32 %v171_v37, %v131_v40 }
 0x12f   :  { %v180_v50 = vmax.f32 %v172_v44, 0.0 }
 0x131   :  { %v184_v53 = vpack.c.bf16 %v180_v50, %v179_v52 }
 0x134   :  { %v174_v39 = vpop.f32.mrf.mxu1 }
 0x135   :  { %v175_v41 = vadd.f32 %v174_v39, %v136_v38 }
 0x137   :  { %v181_v48 = vmax.f32 %v175_v41, 0.0 }
 0x13c   :  { %v176_v43 = vpop.f32.mrf.mxu1 }
 0x13d   :  { %v177_v45 = vadd.f32 %v176_v43, %v141_v42 }
 0x13f   :  { %v182_v49 = vmax.f32 %v177_v45, 0.0 }
 0x141   :  { %v185_v51 = vpack.c.bf16 %v182_v49, %v181_v48 }
 0x143   :  { %197 = vmatpush.bf16.msra.mxu2 %v185_v51 }
 0x147   :  { %198 = vmatpush.bf16.msra.mxu2 %v184_v53 }
 0x14a   :  { %245 = vmatmul.msk.bf16.vlgmr.msra.gmra.mxu2 %vm153_vm2, %v183_v54 }
 0x1cd   :  { %v200_v56 = vpop.f32.mrf.mxu2 }
 0x1ce   :  { %v201_v57 = vadd.f32 %v200_v56, %v187_v55 }
 0x1d0   :  { %204 = vst [vmem:[#allocation3] sm:$0x1] %v201_v57 }
 0x1d1   :  { %215 = dma.vmem_to_hbm [thread:$0]  %s211_s29, 16, %s213_s9, [#allocation4]  }
 0x1d5   :  { %v202_v58 = vpop.f32.mrf.mxu2 }
 0x1d6   :  { %282 = dma.done.wait [#allocation4], 16  }
 0x1d7   :  { %283 = vsyncadd [#allocation4], 4294967280 }
 0x1d8   :  { %220 = vsyncpa [#allocation4], 1 }

</bundles_post_ra>
